<compile_context>
chip_gen: v6e
topology: v6e:2x2x1
jax: 0.10.0
libtpu: 0.0.40
codegen_flags: <defaults>
</compile_context>

<pallas_src>
import numpy as np
import jax
import jax.numpy as jnp
from jax.experimental import pallas as pl
from jax.experimental.pallas import tpu as pltpu


# ----------------------------- sinusoid table (numpy, matches reference) ---------------
def get_sinusoid_encoding_table(n_position, d_hid):
    def get_position_angle_vec(position):
        return [position / np.power(10000, 2 * (hid_j // 2) / d_hid) for hid_j in range(d_hid)]

    sinusoid_table = np.array([get_position_angle_vec(pos_i) for pos_i in range(n_position)])
    sinusoid_table[:, 0::2] = np.sin(sinusoid_table[:, 0::2])
    sinusoid_table[:, 1::2] = np.cos(sinusoid_table[:, 1::2])
    return sinusoid_table[None, :, :].astype(np.float32)  # (1, N, hidden)


def _round_up(x, m):
    return ((x + m - 1) // m) * m


def _choose_tile_n(N, tile_n):
    """Pick TN (multiple of 8). Prefer a divisor of N -> no padding, no wasted MXU rows."""
    cap = max(8, (tile_n // 8) * 8)
    start = min(cap, (N // 8) * 8)
    for d in range(start, 7, -8):
        if N % d == 0:
            return d, N                       # divides the real N: no padding needed
    # Fallback (tiny / odd N): pad N up to a multiple of 8 and tile the padded extent.
    Np = _round_up(N, 8)
    TN = min(cap, Np)
    while Np % TN != 0:
        TN -= 8
    return TN, Np


# ----------------------------- Pallas kernel -------------------------------------------
def _embed_kernel(x_ref, w_ref, pos_ref, out_ref):
    # x_ref: (TN, K) bf16, w_ref: (K, Hp) bf16, pos_ref: (TN, Hp) bf16, out_ref: (TN, Hp)
    acc = jnp.dot(x_ref[...], w_ref[...], preferred_element_type=jnp.float32)   # MXU, f32 acc
    acc = acc + pos_ref[...].astype(jnp.float32)                                # pos + folded bias
    out_ref[...] = acc.astype(out_ref.dtype)


def video_embeddings_pallas(patches, w_proj, pos_bias, *, tile_n=256, out_dtype=jnp.float32):
    """patches: (B, N, K); w_proj: (K, H); pos_bias: (Bp, N, H) with Bp in {1, B}.
    Returns (B, N, H) = patches @ w_proj + pos_bias  (pos_bias broadcast over B if Bp==1)."""
    B, N, K = patches.shape
    H = w_proj.shape[1]
    Bp = pos_bias.shape[0]

    # Lane-dense output: pad hidden to a multiple of 128 (real H=768 is a no-op).
    Hp = _round_up(H, 128)
    # Tile the patch axis with a divisor of N when possible (VideoMAE N=1568 -> TN=224).
    TN, Np = _choose_tile_n(N, tile_n)

    if Hp != H:
        w_proj = jnp.pad(w_proj, ((0, 0), (0, Hp - H)))
        pos_bias = jnp.pad(pos_bias, ((0, 0), (0, 0), (0, Hp - H)))
    if Np != N:  # rare fallback only (tiny/odd N)
        patches = jnp.pad(patches, ((0, 0), (0, Np - N), (0, 0)))
        pos_bias = jnp.pad(pos_bias, ((0, 0), (0, Np - N), (0, 0)))

    # bf16 operands: bf16 MXU and halved HBM traffic for patches, weight AND pos;
    # accumulation stays f32 via preferred_element_type in the kernel.
    patches = patches.astype(jnp.bfloat16)
    w_proj = w_proj.astype(jnp.bfloat16)
    pos_bias = pos_bias.astype(jnp.bfloat16)

    # Grid: N-tiles outermost, batch innermost.  With a shared pos table (Bp==1) the
    # pos block index is constant across consecutive (inner) batch steps, so Pallas
    # skips the re-DMA -> pos is streamed Np//TN times instead of B*Np//TN times.
    pos_idx = (lambda n, b: (0, n, 0)) if Bp == 1 else (lambda n, b: (b, n, 0))

    out = pl.pallas_call(
        _embed_kernel,
        out_shape=jax.ShapeDtypeStruct((B, Np, Hp), out_dtype),
        grid=(Np // TN, B),
        in_specs=[
            # patches tile: (TN, K) rows of the current batch element
            pl.BlockSpec((pl.Squeezed(), TN, K), lambda n, b: (b, n, 0)),
            # projection weight: grid-invariant -> single-buffered, fetched exactly once
            pl.BlockSpec((K, Hp), lambda n, b: (0, 0), pipeline_mode=pl.Buffered(1)),
            # position table (+ folded bias): shared (reused across batch) or per-batch
            pl.BlockSpec((pl.Squeezed(), TN, Hp), pos_idx),
        ],
        out_specs=pl.BlockSpec((pl.Squeezed(), TN, Hp), lambda n, b: (b, n, 0)),
        compiler_params=pltpu.CompilerParams(
            dimension_semantics=("parallel", "parallel")),
    )(patches, w_proj, pos_bias)

    return out[:, :N, :H]


# ----------------------------- glue: patchify + optional masking -----------------------
def extract_patches(pixel_values, tubelet_size, patch_size, dtype=jnp.bfloat16):
    """pixel_values: (B, T, C, H, W) -> (B, N, K) with N=(T//tub)*(H//p)*(W//p), K=C*tub*p*p.
    Patch order matches Conv3d(...).flatten(2).transpose(1, 2): (t', h', w').
    Casts to `dtype` BEFORE the transpose so the im2col round trip moves half the bytes."""
    B, T, C, Hh, Ww = pixel_values.shape
    p0, p1 = patch_size
    tub = tubelet_size
    x = pixel_values.astype(dtype)                                        # early cast
    x = jnp.transpose(x, (0, 2, 1, 3, 4))                                 # (B, C, T, H, W)
    x = x.reshape(B, C, T // tub, tub, Hh // p0, p0, Ww // p1, p1)
    x = jnp.transpose(x, (0, 2, 4, 6, 1, 3, 5, 7))                        # (B,t',h',w',C,dt,dh,dw)
    N = (T // tub) * (Hh // p0) * (Ww // p1)
    K = C * tub * p0 * p1
    return x.reshape(B, N, K)


def video_embeddings_forward(pixel_values, conv_weight, conv_bias, pos_table,
                             tubelet_size, patch_size, bool_masked_pos=None,
                             tile_n=256, out_dtype=jnp.float32):
    """Full VideoEmbeddings.forward. conv_weight: (hidden, C, tub, p0, p1) like nn.Conv3d.
    Output dtype is pinned (default f32) rather than inherited from pixel_values.dtype."""
    hidden = conv_weight.shape[0]
    # TODO(synk): the im2col transpose still materializes one (B, N, K) bf16 copy in HBM;
    # fusing it into the pallas_call input DMA (allow_input_fusion) would remove that
    # round trip, but Mosaic input fusion does not reliably cover this transpose chain.
    patches = extract_patches(pixel_values, tubelet_size, patch_size)     # (B, N, K) bf16
    w_proj = conv_weight.reshape(hidden, -1).T                            # (K, hidden)
    pos_plus_bias = pos_table[0] + conv_bias[None, :]                     # (N, hidden) f32

    if bool_masked_pos is not None:
        # Gather kept rows BEFORE the matmul (static host-side mask; requires an equal
        # number of unmasked patches per batch row, matching the reference reshape).
        # TODO(synk): a PrefetchScalarGridSpec in-kernel row gather over keep_idx would
        # avoid materializing these gathered copies for MAE-style high mask ratios.
        mask_np = np.asarray(bool_masked_pos)
        keep_rows = [np.nonzero(~mask_np[b])[0] for b in range(mask_np.shape[0])]
        keep_idx = jnp.asarray(np.stack(keep_rows, axis=0))               # (B, N_keep)
        patches = jnp.take_along_axis(patches, keep_idx[:, :, None], axis=1)   # (B, Nk, K) bf16
        pos_bias = pos_plus_bias[keep_idx]                                # (B, Nk, hidden)
    else:
        pos_bias = pos_plus_bias[None]                                    # (1, N, hidden)

    return video_embeddings_pallas(patches, w_proj, pos_bias, tile_n=tile_n,
                                   out_dtype=out_dtype)


# ----------------------------- main -----------------------------------------------------
if __name__ == "__main__":
    # Small config consistent with the module.
    B, T, C, Hh, Ww = 2, 4, 4, 16, 16
    patch_size = (8, 8)
    tubelet_size = 2
    hidden = 32
    N = (T // tubelet_size) * (Hh // patch_size[0]) * (Ww // patch_size[1])   # 8
    K = C * tubelet_size * patch_size[0] * patch_size[1]                      # 512

    key = jax.random.PRNGKey(0)
    k1, k2, k3 = jax.random.split(key, 3)
    pixel_values = jax.random.normal(k1, (B, T, C, Hh, Ww), dtype=jnp.float32)
    conv_weight = (jax.random.normal(k2, (hidden, C, tubelet_size, *patch_size),
                                     dtype=jnp.float32) * 0.02)
    conv_bias = (jax.random.normal(k3, (hidden,), dtype=jnp.float32) * 0.02)
    pos_table = jnp.asarray(get_sinusoid_encoding_table(N, hidden))           # (1, N, hidden)

    # Deterministic mask: mask every other patch (equal count per batch row).
    bool_masked_pos = np.zeros((B, N), dtype=bool)
    bool_masked_pos[:, 1::2] = True

    # --- pure-JAX f32 reference (conv-as-matmul + bias + pos emb) ---
    patches_ref = extract_patches(pixel_values, tubelet_size, patch_size, dtype=jnp.float32)
    ref_full = jnp.einsum("bnk,kh->bnh", patches_ref, conv_weight.reshape(hidden, -1).T)
    ref_full = ref_full + conv_bias[None, None, :] + pos_table

    # 1) unmasked path (shared position table, re-used across the inner batch axis)
    out_full = video_embeddings_forward(pixel_values, conv_weight, conv_bias, pos_table,
                                        tubelet_size, patch_size, bool_masked_pos=None)
    out_full = jax.block_until_ready(out_full)
    assert out_full.shape == (B, N, hidden), out_full.shape
    # bf16 pixels/weights/pos with f32 accumulation -> ~1e-2 level differences vs f32 conv
    np.testing.assert_allclose(np.asarray(out_full), np.asarray(ref_full),
                               rtol=2e-2, atol=2e-2)

    # 2) masked path (kept rows gathered before the matmul)
    out = video_embeddings_forward(pixel_values, conv_weight, conv_bias, pos_table,
                                   tubelet_size, patch_size, bool_masked_pos)
    out = jax.block_until_ready(out)
    keep_idx = jnp.asarray(np.stack([np.nonzero(~bool_masked_pos[b])[0] for b in range(B)]))
    ref = jnp.take_along_axis(ref_full, keep_idx[:, :, None], axis=1)
    assert out.shape == (B, N // 2, hidden), out.shape
    np.testing.assert_allclose(np.asarray(out), np.asarray(ref), rtol=2e-2, atol=2e-2)

    print("KERNEL_OK")
</pallas_src>

<mosaic_0001>
module attributes {stable_mosaic.version = 11 : i64} {
  func.func @_embed_kernel(%arg0: i32, %arg1: i32, %arg2: memref<1x8x512xbf16, #tpu.memory_space<vmem>>, %arg3: memref<512x128xbf16, #tpu.memory_space<vmem>>, %arg4: memref<1x8x128xbf16, #tpu.memory_space<vmem>>, %arg5: memref<1x8x128xf32, #tpu.memory_space<vmem>>) attributes {dimension_semantics = [#tpu.dimension_semantics<parallel>, #tpu.dimension_semantics<parallel>], iteration_bounds = array<i64: 1, 2>, scalar_prefetch = 0 : i64, scratch_operands = 0 : i64, tpu.core_type = #tpu.core_type<tc>, window_params = [{transform_indices = @transform_0, window_bounds = array<i64: 1, 8, 512>}, {pipeline_mode = #tpu.pipeline_mode<synchronous>, transform_indices = @transform_1, window_bounds = array<i64: 512, 128>}, {transform_indices = @transform_2, window_bounds = array<i64: 1, 8, 128>}, {transform_indices = @transform_3, window_bounds = array<i64: 1, 8, 128>}]} {
    %c0 = arith.constant 0 : index
    %c0_0 = arith.constant 0 : index
    %c0_1 = arith.constant 0 : index
    %0 = vector.load %arg2[%c0, %c0_0, %c0_1] : memref<1x8x512xbf16, #tpu.memory_space<vmem>>, vector<1x8x512xbf16>
    %1 = vector.shape_cast %0 : vector<1x8x512xbf16> to vector<8x512xbf16>
    %c0_2 = arith.constant 0 : index
    %c0_3 = arith.constant 0 : index
    %2 = vector.load %arg3[%c0_2, %c0_3] : memref<512x128xbf16, #tpu.memory_space<vmem>>, vector<512x128xbf16>
    %cst = arith.constant dense<0.000000e+00> : vector<8x128xf32>
    %3 = tpu.matmul %1, %2, %cst {dimension_numbers = #tpu.dot_dimension_numbers<[1], [0], [0], [1], [0, 0, 1, 1], [], []>} : vector<8x512xbf16>, vector<512x128xbf16>, vector<8x128xf32> -> vector<8x128xf32>
    %c0_4 = arith.constant 0 : index
    %c0_5 = arith.constant 0 : index
    %c0_6 = arith.constant 0 : index
    %4 = vector.load %arg4[%c0_4, %c0_5, %c0_6] : memref<1x8x128xbf16, #tpu.memory_space<vmem>>, vector<1x8x128xbf16>
    %5 = vector.shape_cast %4 : vector<1x8x128xbf16> to vector<8x128xbf16>
    %6 = arith.extf %5 : vector<8x128xbf16> to vector<8x128xf32>
    %7 = arith.addf %3, %6 : vector<8x128xf32>
    %c0_7 = arith.constant 0 : index
    %c0_8 = arith.constant 0 : index
    %c0_9 = arith.constant 0 : index
    %8 = vector.load %arg5[%c0_7, %c0_8, %c0_9] : memref<1x8x128xf32, #tpu.memory_space<vmem>>, vector<1x8x128xf32>
    %9 = vector.shape_cast %8 : vector<1x8x128xf32> to vector<8x128xf32>
    %10 = vector.shape_cast %7 : vector<8x128xf32> to vector<1x8x128xf32>
    tpu.vector_store %arg5[%c0_7, %c0_8, %c0_9], %10 {strides = array<i32>} : memref<1x8x128xf32, #tpu.memory_space<vmem>>, vector<1x8x128xf32>,
    return
  }
  func.func @transform_0(%arg0: i32, %arg1: i32) -> (i32, i32, i32) {
    %c0_i32 = arith.constant 0 : i32
    %c0_i32_0 = arith.constant 0 : i32
    return %arg1, %arg0, %c0_i32 : i32, i32, i32
  }
  func.func @transform_1(%arg0: i32, %arg1: i32) -> (i32, i32) {
    %c0_i32 = arith.constant 0 : i32
    %c0_i32_0 = arith.constant 0 : i32
    %c0_i32_1 = arith.constant 0 : i32
    return %c0_i32, %c0_i32_0 : i32, i32
  }
  func.func @transform_2(%arg0: i32, %arg1: i32) -> (i32, i32, i32) {
    %c0_i32 = arith.constant 0 : i32
    %c0_i32_0 = arith.constant 0 : i32
    %c0_i32_1 = arith.constant 0 : i32
    return %c0_i32, %arg0, %c0_i32_0 : i32, i32, i32
  }
  func.func @transform_3(%arg0: i32, %arg1: i32) -> (i32, i32, i32) {
    %c0_i32 = arith.constant 0 : i32
    %c0_i32_0 = arith.constant 0 : i32
    return %arg1, %arg0, %c0_i32 : i32, i32, i32
  }
}

</mosaic_0001>

<bundles_post_ra>
// kernel: tpu_custom_call.1
= control target key start
LH: loop header
LB: loop body
LE: loop exit
PB: predicated region body
PF: predicated region fallthrough
CT: control target
= control target key end

     0   :  { %8 = vsyncpa [#allocation3], 0  ;;  %s1304_s0 = inlined_call_operand.hbm [shape: bf16[2,8,512], index: 0, kind: input, shape index: {}]   ;;  %s1305_s1 = inlined_call_operand.hbm [shape: bf16[512,128], index: 1, kind: input, shape index: {}]   ;;  %s1306_s2 = inlined_call_operand.hbm [shape: bf16[1,8,128], index: 2, kind: input, shape index: {}]   ;;  %s1307_s3 = inlined_call_operand.hbm [shape: f32[2,8,128], index: 3, kind: output, shape index: {}]  }
   0x1   :  { %10 = vsyncpa [#allocation3 + $0x1], 0 }
   0x2   :  { %11 = vsyncpa [#allocation6], 0 }
   0x3   :  { %12 = vsyncpa [#allocation4], 0 }
   0x4   :  { %14 = vsyncpa [#allocation4 + $0x1], 0  ;;  %s1125_s12 = smov 0   ;;  %s1127_s13 = smov 0  }
   0x5   :  { %s1129_s14 = smov 0   ;;  %s1131_s15 = smov 0  }
   0x6   :  { %s1133_s16 = smov 0   ;;  %s1135_s17 = smov 0  }
   0x7 LB: > { %s713_s18 = sadd.s32 4294967295, %s1097_s17   ;;  %s714_s19 = sadd.s32 4294967294, %s1097_s17   ;;  %s1097_s17 = sphi %s1135_s17, %s20_s17   ;;  %s1093_s16 = sphi %s1133_s16, %s1327_s16   ;;  %s1089_s15 = sphi %s1131_s15, %s1326_s15   ;;  %s1085_s14 = sphi %s1129_s14, %s1325_s14   ;;  %s1081_s13 = sphi %s1127_s13, %s1324_s13   ;;  %s1077_s12 = sphi %s1125_s12, %s1323_s12  }
   0x8   : > { %p54_p0 = scmp.ne.s32.totalorder %s1081_s13, %s1077_s12  ;;  %p1159_p1 = scmp.eq.s32.totalorder %s713_s18, 0 }
   0x9   : > { %p1163_p2 = scmp.eq.s32.totalorder %s713_s18, 1  ;;  %p133_p3 = scmp.eq.s32.totalorder %s714_s19, 1 }
   0xa   : > { %s1311_s20 = scalar_select %p1159_p1, 1, 0 }
   0xb   : > { %p1169_p4 = por %p1159_p1, %p54_p0  ;;  %p715_p5 = scmp.ge.s32.totalorder %s1097_s17, 1 }
   0xc   : > { %p1174_p6 = por %p133_p3, %p54_p0  ;;  %p140_p7 = scmp.lt.s32.totalorder %s1097_s17, 3 }
   0xd   : > { %s1313_s22 = scalar_select %p1169_p4, 1, 0 }
   0xe   : > { %s1314_s23 = scalar_select %p1174_p6, 1, 0 }
   0xf   : > { %p1179_p8 = pnand %p715_p5, %p140_p7  ;;  %s1099_s25 = smov [#allocation5]  }
  0x10   : > { %s152_s26 = sshll.u32 %s1099_s25, 4  ;;  %s1100_s28 = smov [#allocation7]   ;;  %s153_s26 = int_to_ptr.vmem [resolvable:$true] %s152_s26 }
  0x11   : > { %p824_p9 = pneg %p1179_p8  ;;  %s168_s29 = sshll.u32 %s1100_s28, 4  ;;  %s169_s29 = int_to_ptr.vmem [resolvable:$true] %s168_s29 }
  0x12   : > { %s944_s30 = scalar_lea.vmem %s153_s26, 4096  ;;  %p952_p5 = scmp.lt.s32.totalorder %s153_s26, %s153_s26 }
  0x13   : > { %p1188_p11 = pnand %p824_p9, %p1159_p1  ;;  %p945_p13 = scmp.ne.s32.totalorder %s153_s26, %s944_s30 }
  0x14   : > { %p953_p7 = scmp.lt.s32.totalorder %s944_s30, %s944_s30 }
  0x15   : > { %p935_p12 = pneg %p1188_p11 }
  0x16   : > { %p954_p10 = por %p953_p7, %p952_p5 }
  0x17   : > { %p947_p0 = pnand %p945_p13, %p935_p12 }
  0x19   : > { %p948_p3 = pneg %p947_p0 }
  0x1b   : > { %p955_p9 = pnand %p954_p10, %p948_p3 }
  0x1d   : > { %958 = shalt.err (!%p955_p9)
}
  0x1e   : > { %s1101_s4 = smov 64   ;;  %s1102_s5 = smov 4  }
  0x1f   : > { %827 = dma.hbm_to_vmem [thread:$0]  (!%p1188_p11), %s1305_s1, 4096, %s153_s26, [#allocation6], %s1101_s4, %s1101_s4, %s1102_s5  }
  0x20   : > { %s970_s8 = scalar_lea.vmem %s169_s29, 64  ;;  %p978_p1 = scmp.lt.s32.totalorder %s169_s29, %s169_s29 }
  0x21   : > { %p971_p6 = scmp.ne.s32.totalorder %s169_s29, %s970_s8  ;;  %p979_p4 = scmp.lt.s32.totalorder %s970_s8, %s970_s8 }
  0x23   : > { %p973_p13 = pnand %p971_p6, %p935_p12  ;;  %p980_p5 = por %p979_p4, %p978_p1 }
  0x25   : > { %p974_p0 = pneg %p973_p13 }
  0x27   : > { %p981_p10 = pnand %p980_p5, %p974_p0 }
  0x29   : > { %984 = shalt.err (!%p981_p10)
}
  0x2a   : > { %830 = dma.hbm_to_vmem [thread:$0]  (!%p1188_p11), %s1306_s2, 64, %s169_s29, [#allocation6]  }
  0x2b   : > { %s29_s11 = sadd.s32 1, %s1093_s16  ;;  %s41_s18 = sadd.s32 1, %s1085_s14 }
  0x2c   : > { %p30_p1 = scmp.ge.s32.totalorder %s29_s11, 2  ;;  %p48_p4 = scmp.ne.s32.totalorder %s1085_s14, %s1081_s13 }
  0x2d   : > { %p49_p6 = scmp.eq.s32.totalorder %s1097_s17, 0  ;;  %p841_p12 = scmp.lt.s32.totalorder %s1097_s17, 2 }
  0x2e   : > { %s1329_s11 = smov (%p30_p1, %s29_s11), 0  ;;  %p1220_p7 = por %p1163_p2, %p48_p4 }
  0x2f   : > { %p50_p3 = por %p49_p6, %p48_p4  ;;  %s36_s25 = ssub.s32 %s1093_s16, %s1329_s11 }
  0x30   : > { %s179_s26 = sand.u32 1, %s1085_s14   ;;  %p39_p9 = scmp.eq.s32.totalorder %s36_s25, 0 }
  0x31   : > { %s719_s27 = sshll.u32 %s179_s26, 4  ;;  %s767_s28 = sshll.u32 %s1093_s16, 8 }
  0x32   : > { %s1229_s29 = scalar_select %p39_p9, %s1085_s14, %s41_s18  }
  0x33   : > { %s191_s5 = scalar_lea.hbm %s1304_s0, %s767_s28  ;;  %s183_s6 = scalar_lea.vmem [#allocation2], %s719_s27 }
  0x34   : > { %s193_s7 = sshll.u32 %s183_s6, 4  ;;  %p1236_p11 = pnand %p841_p12, %p50_p3  ;;  %s194_s7 = int_to_ptr.vmem [resolvable:$true] %s193_s7 }
  0x35   : > { %s180_s8 = scalar_lea.sflag [#allocation3], %s179_s26  ;;  %s998_s9 = scalar_lea.vmem %s194_s7, 256 }
  0x36   : > { %p987_p2 = pneg %p1236_p11  ;;  %p999_p13 = scmp.ne.s32.totalorder %s194_s7, %s998_s9 }
  0x37   : > { %s1103_s10 = smov [#allocation2]  }
  0x38   : > { %p1001_p0 = pnand %p999_p13, %p987_p2  ;;  %s1003_s18 = sshll.u32 %s1103_s10, 4  ;;  %s1004_s18 = int_to_ptr.vmem [resolvable:$false] %s1003_s18 }
  0x39   : > { %s1005_s25 = scalar_lea.vmem %s1004_s18, 512  ;;  %p1006_p10 = scmp.lt.s32.totalorder %s194_s7, %s1004_s18 }
  0x3a   : > { %p1002_p5 = pneg %p1001_p0  ;;  %p1007_p1 = scmp.lt.s32.totalorder %s1005_s25, %s998_s9 }
  0x3c   : > { %p1008_p4 = por %p1007_p1, %p1006_p10 }
  0x3e   : > { %p1009_p6 = pnand %p1008_p4, %p1002_p5 }
  0x40   : > { %1012 = shalt.err (!%p1009_p6)
}
  0x41   : > { %834 = dma.hbm_to_vmem [thread:$0]  (!%p1236_p11), %s191_s5, 256, %s194_s7, %s180_s8  }
  0x42   : > { %202 = sbr.rel (%p1179_p8) target bundleno = 323 (0x143), region = 32  ;;  %s1247_s26 = sand.u32 (!%p1179_p8), 1, %s1081_s13  }
  0x43   : > { %s723_s27 = sshll.u32 (!%p1179_p8), %s1247_s26, 4  ;;  %s205_s28 = scalar_lea.sflag (!%p1179_p8), [#allocation3], %s1247_s26 }
  0x44   : > { %s1251_s30 = scalar_lea.vmem (!%p1179_p8), [#allocation2], %s723_s27  ;;  %p1319_p12 = scmp.ne.s32.totalorder (!%p1179_p8), %s1313_s22, 0 }
  0x47   : > { %1064 = dma.done.wait (%p1319_p12), %s205_s28, 256  }
  0x48   : > { %1066 = vsyncadd (%p1319_p12), %s205_s28, 4294967040  ;;  %p1320_p3 = scmp.ne.s32.totalorder %s1311_s20, 0 }
  0x4a   : > { %1068 = dma.done.wait (%p1320_p3), [#allocation6], 4160  }
  0x4b   : > { %1070 = vsyncadd (%p1320_p3), [#allocation6], 4294963136  ;;  %v897_v0 = vld [vmem:[#allocation5 + $0x78] sm:$0xff]   ;;  %v901_v4 = vld [vmem:[#allocation5 + $0x70] sm:$0xff]   ;;  %s726_s20 = sshll.u32 %s1247_s26, 3  ;;  %s764_s22 = sshll.u32 %s1089_s15, 7 }
  0x4c   : > { %v898_v1 = vld [vmem:[#allocation5 + $0xf8] sm:$0xff]   ;;  %768 = vmatprep.subr.bf16.mxu0 %v897_v0  ;;  %v902_v5 = vld [vmem:[#allocation5 + $0xf0] sm:$0xff]   ;;  %v905_v8 = vld [vmem:[#allocation5 + $0x68] sm:$0xff]   ;;  %s238_s24 = scalar_lea.vmem [#allocation8], %s726_s20  ;;  %s608_s7 = scalar_lea.hbm %s1307_s3, %s764_s22 }
  0x4d   : > { %v899_v2 = vld [vmem:[#allocation5 + $0x38] sm:$0xff]   ;;  %790 = vmatprep.subr.bf16.mxu1 %v898_v1  ;;  %v903_v6 = vld [vmem:[#allocation5 + $0x30] sm:$0xff]   ;;  %v906_v9 = vld [vmem:[#allocation5 + $0xe8] sm:$0xff]   ;;  %s610_s4 = sshll.u32 %s238_s24, 4  ;;  %s596_s21 = scalar_lea.sflag [#allocation4], %s1247_s26  ;;  %s611_s4 = int_to_ptr.vmem [resolvable:$true] %s610_s4 }
  0x4e   : > { %v900_v3 = vld [vmem:[#allocation5 + $0xb8] sm:$0xff]   ;;  %769 = vmatpush3.bf16.msra.mxu0 %v899_v2  ;;  %v904_v7 = vld [vmem:[#allocation5 + $0xb0] sm:$0xff]   ;;  %v907_v10 = vld [vmem:[#allocation5 + $0x28] sm:$0xff]   ;;  %s1013_s8 = scalar_lea.vmem %s611_s4, 128  ;;  %s1104_s15 = smov [#allocation8]  }
  0x4f   : > { %791 = vmatpush3.bf16.msra.mxu1 %v900_v3  ;;  %770 = vmatprep.subr.bf16.mxu0 %v901_v4  ;;  %v908_v11 = vld [vmem:[#allocation5 + $0xa8] sm:$0xff]   ;;  %v909_v12 = vld [vmem:[#allocation5 + $0x60] sm:$0xff]   ;;  %v913_v16 = vld [vmem:[#allocation5 + $0x58] sm:$0xff]   ;;  %p1014_p8 = scmp.ne.s32.totalorder %s611_s4, %s1013_s8  ;;  %s1017_s9 = sshll.u32 %s1104_s15, 4  ;;  %s1018_s9 = int_to_ptr.vmem [resolvable:$false] %s1017_s9 }
  0x50   : > { %792 = vmatprep.subr.bf16.mxu1 %v902_v5  ;;  %v910_v13 = vld [vmem:[#allocation5 + $0xe0] sm:$0xff]   ;;  %v914_v17 = vld [vmem:[#allocation5 + $0xd8] sm:$0xff]   ;;  %v917_v20 = vld [vmem:[#allocation5 + $0x50] sm:$0xff]   ;;  %s1019_s10 = scalar_lea.vmem %s1018_s9, 256  ;;  %p1020_p2 = scmp.lt.s32.totalorder %s611_s4, %s1018_s9 }
  0x51   : > { %v911_v14 = vld [vmem:[#allocation5 + $0x20] sm:$0xff]   ;;  %v915_v18 = vld [vmem:[#allocation5 + $0x18] sm:$0xff]   ;;  %v918_v21 = vld [vmem:[#allocation5 + $0xd0] sm:$0xff]   ;;  %p1015_p9 = pnand %p1014_p8, %p1220_p7  ;;  %p1021_p13 = scmp.lt.s32.totalorder %s1019_s10, %s1013_s8 }
  0x52   : > { %771 = vmatpush3.bf16.msra.mxu0 %v903_v6  ;;  %v912_v15 = vld [vmem:[#allocation5 + $0xa0] sm:$0xff]   ;;  %v916_v19 = vld [vmem:[#allocation5 + $0x98] sm:$0xff]   ;;  %v919_v22 = vld [vmem:[#allocation5 + $0x10] sm:$0xff]  }
  0x53   : > { %793 = vmatpush3.bf16.msra.mxu1 %v904_v7  ;;  %772 = vmatprep.subr.bf16.mxu0 %v905_v8  ;;  %v920_v23 = vld [vmem:[#allocation5 + $0x90] sm:$0xff]   ;;  %v921_v24 = vld [vmem:[#allocation5 + $0x48] sm:$0xff]   ;;  %v925_v28 = vld [vmem:[#allocation5 + $0x40] sm:$0xff]   ;;  %p1016_p11 = pneg %p1015_p9  ;;  %p1022_p0 = por %p1021_p13, %p1020_p2 }
  0x54   : > { %794 = vmatprep.subr.bf16.mxu1 %v906_v9  ;;  %v922_v25 = vld [vmem:[#allocation5 + $0xc8] sm:$0xff]   ;;  %v926_v29 = vld [vmem:[#allocation5 + $0xc0] sm:$0xff]  }
  0x55   : > { %v923_v26 = vld [vmem:[#allocation5 + $0x8] sm:$0xff]   ;;  %v927_v30 = vld [vmem:[#allocation5] sm:$0xff]   ;;  %p1023_p5 = pnand %p1022_p0, %p1016_p11 }
  0x56   : > { %773 = vmatpush3.bf16.msra.mxu0 %v907_v10  ;;  %v924_v27 = vld [vmem:[#allocation5 + $0x88] sm:$0xff]   ;;  %v928_v31 = vld [vmem:[#allocation5 + $0x80] sm:$0xff]  }
  0x57   : > { %795 = vmatpush3.bf16.msra.mxu1 %v908_v11  ;;  %774 = vmatprep.subr.bf16.mxu0 %v909_v12  ;;  %v240_v32 = vld [vmem:[%s1251_s30] sm:$0xff]  ;;  %v241_v33 = vld [vmem:[%s1251_s30 + $0x8] sm:$0xff] }
  0x58   : > { %796 = vmatprep.subr.bf16.mxu1 %v910_v13  ;;  %v727_v34 = vcombine.low %v240_v32, %v240_v32  ;;  %v728_v35 = vcombine.high %v240_v32, %v240_v32  ;;  %v729_v36 = vcombine.low %v241_v33, %v241_v33  ;;  %v730_v37 = vcombine.high %v241_v33, %v241_v33  ;;  %v306_v38 = vld [vmem:[#allocation7] sm:$0xf] }
  0x59   : > { %v307_v41 = vunpack.c.l.bf16 %v306_v38 }
  0x5a   : > { %775 = vmatpush3.bf16.msra.mxu0 %v911_v14  ;;  %546 = vmatprep.mubr.bf16.mxu0 %v728_v35 }
  0x5b   : > { %797 = vmatpush3.bf16.msra.mxu1 %v912_v15  ;;  %776 = vmatprep.subr.bf16.mxu0 %v913_v16 }
  0x5c   : > { %798 = vmatprep.subr.bf16.mxu1 %v914_v17  ;;  %586 = vmatprep.mubr.bf16.mxu1 %v730_v37 }
  0x5e   : > { %777 = vmatpush3.bf16.msra.mxu0 %v915_v18 }
  0x5f   : > { %799 = vmatpush3.bf16.msra.mxu1 %v916_v19  ;;  %778 = vmatprep.subr.bf16.mxu0 %v917_v20 }
  0x60   : > { %800 = vmatprep.subr.bf16.mxu1 %v918_v21 }
  0x62   : > { %779 = vmatpush3.bf16.msra.mxu0 %v919_v22 }
  0x63   : > { %801 = vmatpush3.bf16.msra.mxu1 %v920_v23  ;;  %780 = vmatprep.subr.bf16.mxu0 %v921_v24 }
  0x64   : > { %802 = vmatprep.subr.bf16.mxu1 %v922_v25 }
  0x66   : > { %781 = vmatpush3.bf16.msra.mxu0 %v923_v26 }
  0x67   : > { %803 = vmatpush3.bf16.msra.mxu1 %v924_v27  ;;  %782 = vmatprep.subr.bf16.mxu0 %v925_v28 }
  0x68   : > { %804 = vmatprep.subr.bf16.mxu1 %v926_v29 }
  0x6a   : > { %783 = vmatpush3.bf16.msra.mxu0 %v927_v30 }
  0x6b   : > { %805 = vmatpush3.bf16.msra.mxu1 %v928_v31 }
  0x6d   : > { %547 = vmatmul.mubr.bf16.vlgmr.msra.gmra.mxu0 %v727_v34 }
  0x6e   : > { %587 = vmatmul.mubr.bf16.vlgmr.msra.gmra.mxu1 %v729_v36 }
 0x12d   : > { %v784_v39 = vpop.f32.mrf.mxu0 }
 0x12e   : > { %v806_v40 = vpop.f32.mrf.mxu1 }
 0x12f   : > { %v785_v42 = vpop.f32.mrf.mxu0 }
 0x130   : > { %v807_v43 = vpop.f32.mrf.mxu1  ;;  %v786_v44 = vadd.f32 %v785_v42, %v784_v39 }
 0x131   : > { %v787_v45 = vpop.f32.mrf.mxu0  ;;  %v808_v48 = vadd.f32 %v807_v43, %v806_v40 }
 0x132   : > { %v809_v46 = vpop.f32.mrf.mxu1  ;;  %v549_v47 = vadd.f32 %v786_v44, %v307_v41 }
 0x133   : > { %v788_v49 = vpop.f32.mrf.mxu0 }
 0x134   : > { %v810_v50 = vpop.f32.mrf.mxu1  ;;  %v589_v51 = vadd.f32 %v808_v48, %v549_v47 }
 0x136   : > { %594 = vst [vmem:[%s238_s24] sm:$0xff] %v589_v51 }
 0x137   : > { %1026 = shalt.err (!%p1023_p5)
}
 0x138   : > { %s1027_s18 = scalar_lea.hbm %s608_s7, 128  ;;  %s1031_s27 = scalar_lea.hbm %s1307_s3, 256 }
 0x139   : > { %p1028_p10 = scmp.ne.s32.totalorder %s608_s7, %s1027_s18  ;;  %p1032_p6 = scmp.lt.s32.totalorder %s608_s7, %s1307_s3 }
 0x13a   : > { %p1033_p12 = scmp.lt.s32.totalorder %s1031_s27, %s1027_s18 }
 0x13b   : > { %p1029_p1 = pnand %p1028_p10, %p1220_p7 }
 0x13c   : > { %p1034_p3 = por %p1033_p12, %p1032_p6 }
 0x13d   : > { %p1030_p4 = pneg %p1029_p1 }
 0x13f   : > { %p1035_p8 = pnand %p1034_p3, %p1030_p4 }
 0x141   : > { %1038 = shalt.err (!%p1035_p8)
}
 0x142   : > { %822 = dma.vmem_to_hbm [thread:$0]  (%p1220_p7), %s611_s4, 128, %s608_s7, %s596_s21  }
 0x143 PF: > { %s622_s20 = sand.u32 1, %s1077_s12   ;;  %p1321_p9 = scmp.ne.s32.totalorder %s1314_s23, 0 }
 0x144   : > { %p1322_p11 = scmp.ge.s32.totalorder %s1097_s17, 2  ;;  %s623_s22 = scalar_lea.sflag [#allocation4], %s622_s20 }
 0x146   : > { %p836_p2 = pnand %p1322_p11, %p1321_p9 }
 0x148   : > { %p837_p13 = pneg %p836_p2 }
 0x14a   : > { %1072 = dma.done.wait (%p837_p13), %s623_s22, 128  }
 0x14b   : > { %1074 = vsyncadd (%p837_p13), %s623_s22, 4294967168  ;;  %s20_s17 = sadd.s32 1, %s1097_s17   ;;  %s1323_s12 = smov %s1081_s13 }
 0x14c   : > { %p17_p0 = scmp.ge.s32.totalorder %s20_s17, 4   ;;  %s1324_s13 = smov %s1085_s14 }
 0x14d   : > { %s1325_s14 = smov %s1229_s29  ;;  %s1326_s15 = smov %s1093_s16 }
 0x14e   : > { %s1327_s16 = smov %s1329_s11  ;;  %19 = sbr.rel (!%p17_p0) target bundleno = 7 (0x7), region = 86 }
 0x153   :  { %628 = vsyncpa [#allocation3], 1 }
 0x154   :  { %630 = vsyncpa [#allocation3 + $0x1], 1 }
 0x155   :  { %631 = vsyncpa [#allocation6], 1 }
 0x156   :  { %632 = vsyncpa [#allocation4], 1 }
 0x157   :  { %634 = vsyncpa [#allocation4 + $0x1], 1 }

</bundles_post_ra>
